<compile_context>
chip_gen: v5e
topology: v5e:2x2
jax: 0.10.0
libtpu: 0.0.40
codegen_flags: <defaults>
</compile_context>

<pallas_src>
import functools
import math

import jax
import jax.numpy as jnp
from jax.experimental import pallas as pl
from jax.experimental.pallas import tpu as pltpu


# --------------------------------------------------------------------------- #
# Helpers
# --------------------------------------------------------------------------- #
def _round_up(x, m):
    return ((x + m - 1) // m) * m


def _pad_to(a, shape):
    """Zero-pad trailing edges; no-op (no copy op emitted) if already sized."""
    pads = [(0, t - s) for s, t in zip(a.shape, shape)]
    if any(p[1] for p in pads):
        return jnp.pad(a, pads)
    return a


def _vmem_capacity_bytes():
    """Per-core VMEM capacity; conservative v7x default if query fails."""
    try:
        info = pltpu.get_tpu_info()
        cap = getattr(info, "vmem_capacity_bytes", None)
        if cap:
            return int(cap)
    except Exception:
        pass
    return 64 * 1024 * 1024


def _vmem_usage(tile_m, tile_h, cin_p, cout_p, out_itemsize, w_buffers):
    """Rough per-step VMEM footprint (bytes) for the chosen tiling."""
    x_blk = tile_m * cin_p * 2 * 2                 # bf16 input, double-buffered
    w1_blk = cin_p * tile_h * 2 * w_buffers        # bf16 W1 chunk
    b1_blk = tile_h * 4 * w_buffers
    w2_blk = tile_h * cout_p * 2 * w_buffers       # bf16 W2 chunk
    b2_blk = cout_p * 4 * w_buffers
    o_blk = tile_m * cout_p * out_itemsize * 2     # output, double-buffered
    acc = tile_m * cout_p * 4                      # f32 accumulator scratch
    h_tmp = tile_m * tile_h * 4 * 2                # fc1 f32 intermediate + GELU temps
    return x_blk + w1_blk + b1_blk + w2_blk + b2_blk + o_blk + acc + h_tmp


def _select_tile_h(cin_p, cout_p, h_p, out_itemsize, budget, assumed_tile_m,
                   single_buffer_ok):
    """Largest hidden chunk that fits the VMEM budget; prefer full residency."""
    candidates = [h_p]
    seen = {h_p}
    c = (h_p // 512) * 512
    while c >= 512:
        if c not in seen:
            candidates.append(c)
            seen.add(c)
        c -= 512
    for c in (256, 128):
        if c < h_p and c not in seen:
            candidates.append(c)
    for th in candidates:
        wb = 1 if (th == h_p and single_buffer_ok) else 2
        if _vmem_usage(assumed_tile_m, th, cin_p, cout_p, out_itemsize, wb) <= budget:
            return th
    return 128


# --------------------------------------------------------------------------- #
# Kernel
# --------------------------------------------------------------------------- #
def _mlp_kernel(x_ref, w1_ref, b1_ref, w2_ref, b2_ref, o_ref, acc_ref, *,
                approximate_gelu):
    # x_ref : (TM, Cin_p)  bf16    w1_ref: (Cin_p, TH)  bf16   b1_ref: (1, TH)   f32
    # w2_ref: (TH, Cout_p) bf16    b2_ref: (1, Cout_p)  f32
    # o_ref : (TM, Cout_p)         acc_ref: (TM, Cout_p) f32 scratch (lives over hk)
    hk = pl.program_id(1)

    @pl.when(hk == 0)
    def _init():
        # Fold the fc2 bias into the accumulator -> epilogue is a pure cast.
        acc_ref[...] = jnp.broadcast_to(b2_ref[...], acc_ref.shape)

    # fc1 chunk (bf16 MXU operands, f32 accumulation) + bias + GELU.
    h = jnp.dot(x_ref[...], w1_ref[...], preferred_element_type=jnp.float32)
    h = h + b1_ref[...]
    # tanh GELU lowers to the EUP slot (free beside MXU/VPU); erf is a long
    # VPU polynomial.  Default tanh; error is below bf16 quantization noise.
    h = jax.nn.gelu(h, approximate=approximate_gelu)

    # Partial fc2 for this hidden chunk, accumulated in f32.
    acc_ref[...] += jnp.dot(h.astype(w2_ref.dtype), w2_ref[...],
                            preferred_element_type=jnp.float32)

    @pl.when(hk == pl.num_programs(1) - 1)
    def _finalize():
        o_ref[...] = acc_ref[...].astype(o_ref.dtype)


# --------------------------------------------------------------------------- #
# Parameter preparation (hoisted: pad + cast weights ONCE, not per forward)
# --------------------------------------------------------------------------- #
def prepare_mlp_params(w1, b1, w2, b2, *, compute_dtype=jnp.bfloat16,
                       tile_h=None, assumed_tile_m=512):
    """Pads/casts weights for the kernel and picks the hidden-dim tiling.

    nn.Linear weights are stored pre-transposed for row-major matmuls:
      w1: (C_in, H), b1: (H,), w2: (H, C_out), b2: (C_out,)
    """
    C_in, H = w1.shape
    H2, C_out = w2.shape
    assert H2 == H and b1.shape == (H,) and b2.shape == (C_out,)

    cin_p = _round_up(C_in, 128)
    cout_p = _round_up(C_out, 128)
    h_p = _round_up(H, 128)

    cap = _vmem_capacity_bytes()
    vmem_limit = int(cap * 3 // 4)          # ~48 MiB on v7x, ~96 MiB on v5e/v6e
    budget = int(vmem_limit * 0.85)

    single_buffer_ok = hasattr(pl, "Buffered")
    if tile_h is None:
        tile_h = _select_tile_h(cin_p, cout_p, h_p, 4, budget, assumed_tile_m,
                                single_buffer_ok)
    tile_h = max(128, _round_up(tile_h, 128))
    if tile_h >= h_p:
        tile_h = h_p
    num_h = pl.cdiv(h_p, tile_h)
    h_pad = num_h * tile_h

    params = {
        "w1": _pad_to(w1.astype(compute_dtype), (cin_p, h_pad)),
        "w2": _pad_to(w2.astype(compute_dtype), (h_pad, cout_p)),
        "b1": _pad_to(b1.astype(jnp.float32).reshape(1, H), (1, h_pad)),
        "b2": _pad_to(b2.astype(jnp.float32).reshape(1, C_out), (1, cout_p)),
        "C_in": C_in, "H": H, "C_out": C_out,
        "cin_p": cin_p, "cout_p": cout_p, "h_pad": h_pad,
        "tile_h": tile_h, "num_h": num_h,
        "compute_dtype": compute_dtype,
        "vmem_limit": vmem_limit,
    }
    return params


# --------------------------------------------------------------------------- #
# Forward
# --------------------------------------------------------------------------- #
def mlp_pallas(x, params, *, tile_m=None, approximate_gelu=True):
    """Fused MLP forward.  x: [..., C_in] -> [..., C_out]."""
    *lead, C_in = x.shape
    assert C_in == params["C_in"]
    M = int(math.prod(lead)) if lead else 1
    out_dtype = x.dtype

    cin_p = params["cin_p"]
    cout_p = params["cout_p"]
    h_pad = params["h_pad"]
    tile_h = params["tile_h"]
    num_h = params["num_h"]
    C_out = params["C_out"]
    compute_dtype = params["compute_dtype"]

    # ---- token-row tiling ---------------------------------------------------
    m_min = _round_up(max(M, 1), 8)
    if tile_m is None:
        if M <= 512:
            tile_m = m_min          # single grid step; don't shred tiny M
        else:
            tile_m = 512            # 256-multiple keeps 256x256 MXU (v6e/v7x) full
    tile_m = max(8, _round_up(tile_m, 8))
    num_m = pl.cdiv(M, tile_m)      # no forced-even padding (waste on 1-TC chips)
    m_pad = num_m * tile_m

    # ---- activations: cast + (conditionally) pad ----------------------------
    x2 = x.reshape(M, C_in).astype(compute_dtype)
    x_p = _pad_to(x2, (m_pad, cin_p))

    w1_p, b1_p, w2_p, b2_p = params["w1"], params["b1"], params["w2"], params["b2"]

    # ---- advisory cost estimate ---------------------------------------------
    weight_bytes = (w1_p.size + w2_p.size) * 2 + (b1_p.size + b2_p.size) * 4
    weight_reads = num_m if num_h > 1 else 1   # resident weights are fetched once
    cost = pl.CostEstimate(
        flops=int(2 * m_pad * h_pad * (cin_p + cout_p)),
        transcendentals=int(m_pad * h_pad),
        bytes_accessed=int(x_p.size * 2 + weight_bytes * weight_reads
                           + m_pad * cout_p * jnp.dtype(out_dtype).itemsize),
    )

    kernel = functools.partial(_mlp_kernel, approximate_gelu=approximate_gelu)
    weights_invariant = (num_h == 1)

    def _call(single_buffer_weights):
        def wspec(shape, imap):
            # Grid-invariant weight blocks: single buffer halves their VMEM
            # footprint (matters on v7x's 64 MiB) at zero cost.
            if single_buffer_weights:
                return pl.BlockSpec(shape, imap, pipeline_mode=pl.Buffered(1))
            return pl.BlockSpec(shape, imap)

        grid_spec = pltpu.PrefetchScalarGridSpec(
            num_scalar_prefetch=0,
            grid=(num_m, num_h),
            in_specs=[
                pl.BlockSpec((tile_m, cin_p), lambda i, k: (i, 0)),   # x rows
                wspec((cin_p, tile_h), lambda i, k: (0, k)),          # W1 chunk
                wspec((1, tile_h), lambda i, k: (0, k)),              # b1 chunk
                wspec((tile_h, cout_p), lambda i, k: (k, 0)),         # W2 chunk
                wspec((1, cout_p), lambda i, k: (0, 0)),              # b2
            ],
            out_specs=pl.BlockSpec((tile_m, cout_p), lambda i, k: (i, 0)),
            scratch_shapes=[pltpu.VMEM((tile_m, cout_p), jnp.float32)],
        )
        return pl.pallas_call(
            kernel,
            out_shape=jax.ShapeDtypeStruct((m_pad, cout_p), out_dtype),
            grid_spec=grid_spec,
            compiler_params=pltpu.CompilerParams(
                dimension_semantics=("parallel", "arbitrary"),
                vmem_limit_bytes=int(params["vmem_limit"]),
            ),
            cost_estimate=cost,
        )(x_p, w1_p, b1_p, w2_p, b2_p)

    if weights_invariant and hasattr(pl, "Buffered"):
        try:
            out = _call(True)
        except Exception:
            out = _call(False)   # older jax / unsupported Buffered(1): fall back
    else:
        out = _call(False)

    return out[:M, :C_out].reshape(*lead, C_out)


# --------------------------------------------------------------------------- #
# Demo / self-check
# --------------------------------------------------------------------------- #
if __name__ == "__main__":
    # Small shapes consistent with an Mlp inside a transformer block:
    #   batch=2, seq=8, in_features=32, hidden_features=64, out_features=32
    B, N = 2, 8
    C_in, H, C_out = 32, 64, 32

    key = jax.random.PRNGKey(0)
    kx, kw1, kb1, kw2, kb2 = jax.random.split(key, 5)

    x = jax.random.normal(kx, (B, N, C_in), dtype=jnp.float32)
    # nn.Linear shapes W1[H,C_in], W2[C_out,H]; stored pre-transposed here.
    w1 = jax.random.normal(kw1, (C_in, H), dtype=jnp.float32) * 0.05
    b1 = jax.random.normal(kb1, (H,), dtype=jnp.float32) * 0.05
    w2 = jax.random.normal(kw2, (H, C_out), dtype=jnp.float32) * 0.05
    b2 = jax.random.normal(kb2, (C_out,), dtype=jnp.float32) * 0.05

    params = prepare_mlp_params(w1, b1, w2, b2)   # pad/cast hoisted out of forward
    y = mlp_pallas(x, params)
    y = jax.block_until_ready(y)

    # Pure-JAX f32 reference (Linear -> exact GELU -> Linear, dropout p=0).
    ref = jnp.dot(x, w1) + b1
    ref = jax.nn.gelu(ref, approximate=False)
    ref = jnp.dot(ref, w2) + b2

    assert y.shape == (B, N, C_out)
    # bf16 MXU operands + tanh GELU -> tolerance loosened vs f32/erf reference.
    assert jnp.allclose(y, ref, atol=2e-2, rtol=2e-2), "mismatch vs reference"
    print("KERNEL_OK")
</pallas_src>

<mosaic_0001>
module attributes {stable_mosaic.version = 11 : i64} {
  func.func @_mlp_kernel(%arg0: i32, %arg1: i32, %arg2: memref<16x128xbf16, #tpu.memory_space<vmem>>, %arg3: memref<128x128xbf16, #tpu.memory_space<vmem>>, %arg4: memref<1x128xf32, #tpu.memory_space<vmem>>, %arg5: memref<128x128xbf16, #tpu.memory_space<vmem>>, %arg6: memref<1x128xf32, #tpu.memory_space<vmem>>, %arg7: memref<16x128xf32, #tpu.memory_space<vmem>>, %arg8: memref<16x128xf32, #tpu.memory_space<vmem>>) attributes {dimension_semantics = [#tpu.dimension_semantics<parallel>, #tpu.dimension_semantics<arbitrary>], iteration_bounds = array<i64: 1, 1>, scalar_prefetch = 0 : i64, scratch_operands = 1 : i64, tpu.core_type = #tpu.core_type<tc>, window_params = [{transform_indices = @transform_0, window_bounds = array<i64: 16, 128>}, {pipeline_mode = #tpu.pipeline_mode<synchronous>, transform_indices = @transform_1, window_bounds = array<i64: 128, 128>}, {pipeline_mode = #tpu.pipeline_mode<synchronous>, transform_indices = @transform_2, window_bounds = array<i64: 1, 128>}, {pipeline_mode = #tpu.pipeline_mode<synchronous>, transform_indices = @transform_3, window_bounds = array<i64: 128, 128>}, {pipeline_mode = #tpu.pipeline_mode<synchronous>, transform_indices = @transform_4, window_bounds = array<i64: 1, 128>}, {transform_indices = @transform_5, window_bounds = array<i64: 16, 128>}]} {
    %c0_i32 = arith.constant 0 : i32
    %0 = arith.cmpi eq, %arg1, %c0_i32 : i32
    %1 = arith.extui %0 : i1 to i32
    %c0_i32_0 = arith.constant 0 : i32
    %2 = arith.cmpi ne, %1, %c0_i32_0 : i32
    scf.if %2 {
      %c0_19 = arith.constant 0 : index
      %c0_20 = arith.constant 0 : index
      %31 = vector.load %arg6[%c0_19, %c0_20] : memref<1x128xf32, #tpu.memory_space<vmem>>, vector<1x128xf32>
      %32 = vector.shape_cast %31 : vector<1x128xf32> to vector<1x128xf32>
      %33 = vector.broadcast %32 : vector<1x128xf32> to vector<16x128xf32>
      %c0_21 = arith.constant 0 : index
      %c0_22 = arith.constant 0 : index
      %34 = vector.load %arg8[%c0_21, %c0_22] : memref<16x128xf32, #tpu.memory_space<vmem>>, vector<16x128xf32>
      tpu.vector_store %arg8[%c0_21, %c0_22], %33 {strides = array<i32>} : memref<16x128xf32, #tpu.memory_space<vmem>>, vector<16x128xf32>,
    } else {
    }
    %c0 = arith.constant 0 : index
    %c0_1 = arith.constant 0 : index
    %3 = vector.load %arg2[%c0, %c0_1] : memref<16x128xbf16, #tpu.memory_space<vmem>>, vector<16x128xbf16>
    %c0_2 = arith.constant 0 : index
    %c0_3 = arith.constant 0 : index
    %4 = vector.load %arg3[%c0_2, %c0_3] : memref<128x128xbf16, #tpu.memory_space<vmem>>, vector<128x128xbf16>
    %cst = arith.constant dense<0.000000e+00> : vector<16x128xf32>
    %5 = tpu.matmul %3, %4, %cst {dimension_numbers = #tpu.dot_dimension_numbers<[1], [0], [0], [1], [0, 0, 1, 1], [], []>} : vector<16x128xbf16>, vector<128x128xbf16>, vector<16x128xf32> -> vector<16x128xf32>
    %c0_4 = arith.constant 0 : index
    %c0_5 = arith.constant 0 : index
    %6 = vector.load %arg4[%c0_4, %c0_5] : memref<1x128xf32, #tpu.memory_space<vmem>>, vector<1x128xf32>
    %7 = vector.broadcast %6 : vector<1x128xf32> to vector<16x128xf32>
    %8 = arith.addf %5, %7 : vector<16x128xf32>
    %9 = arith.mulf %8, %8 : vector<16x128xf32>
    %10 = arith.mulf %8, %9 : vector<16x128xf32>
    %cst_6 = arith.constant 4.471500e-02 : f32
    %11 = vector.broadcast %cst_6 : f32 to vector<16x128xf32>
    %12 = arith.mulf %11, %10 : vector<16x128xf32>
    %13 = arith.addf %8, %12 : vector<16x128xf32>
    %cst_7 = arith.constant 0.797884583 : f32
    %14 = vector.broadcast %cst_7 : f32 to vector<16x128xf32>
    %15 = arith.mulf %14, %13 : vector<16x128xf32>
    %16 = math.tanh %15 : vector<16x128xf32>
    %cst_8 = arith.constant 1.000000e+00 : f32
    %17 = vector.broadcast %cst_8 : f32 to vector<16x128xf32>
    %18 = arith.addf %17, %16 : vector<16x128xf32>
    %cst_9 = arith.constant 5.000000e-01 : f32
    %19 = vector.broadcast %cst_9 : f32 to vector<16x128xf32>
    %20 = arith.mulf %19, %18 : vector<16x128xf32>
    %21 = arith.mulf %8, %20 : vector<16x128xf32>
    %c0_10 = arith.constant 0 : index
    %c0_11 = arith.constant 0 : index
    %22 = vector.load %arg8[%c0_10, %c0_11] : memref<16x128xf32, #tpu.memory_space<vmem>>, vector<16x128xf32>
    %23 = arith.truncf %21 : vector<16x128xf32> to vector<16x128xbf16>
    %c0_12 = arith.constant 0 : index
    %c0_13 = arith.constant 0 : index
    %24 = vector.load %arg5[%c0_12, %c0_13] : memref<128x128xbf16, #tpu.memory_space<vmem>>, vector<128x128xbf16>
    %cst_14 = arith.constant dense<0.000000e+00> : vector<16x128xf32>
    %25 = tpu.matmul %23, %24, %cst_14 {dimension_numbers = #tpu.dot_dimension_numbers<[1], [0], [0], [1], [0, 0, 1, 1], [], []>} : vector<16x128xbf16>, vector<128x128xbf16>, vector<16x128xf32> -> vector<16x128xf32>
    %26 = arith.addf %22, %25 : vector<16x128xf32>
    %c0_15 = arith.constant 0 : index
    %c0_16 = arith.constant 0 : index
    %27 = vector.load %arg8[%c0_15, %c0_16] : memref<16x128xf32, #tpu.memory_space<vmem>>, vector<16x128xf32>
    tpu.vector_store %arg8[%c0_15, %c0_16], %26 {strides = array<i32>} : memref<16x128xf32, #tpu.memory_space<vmem>>, vector<16x128xf32>,
    %c0_i32_17 = arith.constant 0 : i32
    %28 = arith.cmpi eq, %arg1, %c0_i32_17 : i32
    %29 = arith.extui %28 : i1 to i32
    %c0_i32_18 = arith.constant 0 : i32
    %30 = arith.cmpi ne, %29, %c0_i32_18 : i32
    scf.if %30 {
      %c0_19 = arith.constant 0 : index
      %c0_20 = arith.constant 0 : index
      %31 = vector.load %arg8[%c0_19, %c0_20] : memref<16x128xf32, #tpu.memory_space<vmem>>, vector<16x128xf32>
      %c0_21 = arith.constant 0 : index
      %c0_22 = arith.constant 0 : index
      %32 = vector.load %arg7[%c0_21, %c0_22] : memref<16x128xf32, #tpu.memory_space<vmem>>, vector<16x128xf32>
      tpu.vector_store %arg7[%c0_21, %c0_22], %31 {strides = array<i32>} : memref<16x128xf32, #tpu.memory_space<vmem>>, vector<16x128xf32>,
    } else {
    }
    return
  }
  func.func @transform_0(%arg0: i32, %arg1: i32) -> (i32, i32) {
    %c0_i32 = arith.constant 0 : i32
    %c0_i32_0 = arith.constant 0 : i32
    return %arg0, %c0_i32 : i32, i32
  }
  func.func @transform_1(%arg0: i32, %arg1: i32) -> (i32, i32) {
    %c0_i32 = arith.constant 0 : i32
    %c0_i32_0 = arith.constant 0 : i32
    return %c0_i32, %arg1 : i32, i32
  }
  func.func @transform_2(%arg0: i32, %arg1: i32) -> (i32, i32) {
    %c0_i32 = arith.constant 0 : i32
    %c0_i32_0 = arith.constant 0 : i32
    return %c0_i32, %arg1 : i32, i32
  }
  func.func @transform_3(%arg0: i32, %arg1: i32) -> (i32, i32) {
    %c0_i32 = arith.constant 0 : i32
    %c0_i32_0 = arith.constant 0 : i32
    return %arg1, %c0_i32 : i32, i32
  }
  func.func @transform_4(%arg0: i32, %arg1: i32) -> (i32, i32) {
    %c0_i32 = arith.constant 0 : i32
    %c0_i32_0 = arith.constant 0 : i32
    %c0_i32_1 = arith.constant 0 : i32
    return %c0_i32, %c0_i32_0 : i32, i32
  }
  func.func @transform_5(%arg0: i32, %arg1: i32) -> (i32, i32) {
    %c0_i32 = arith.constant 0 : i32
    %c0_i32_0 = arith.constant 0 : i32
    return %arg0, %c0_i32 : i32, i32
  }
}

module attributes {stable_mosaic.version = 11 : i64} {
  func.func @_mlp_kernel(%arg0: i32, %arg1: i32, %arg2: memref<16x128xbf16, #tpu.memory_space<vmem>>, %arg3: memref<128x128xbf16, #tpu.memory_space<vmem>>, %arg4: memref<1x128xf32, #tpu.memory_space<vmem>>, %arg5: memref<128x128xbf16, #tpu.memory_space<vmem>>, %arg6: memref<1x128xf32, #tpu.memory_space<vmem>>, %arg7: memref<16x128xf32, #tpu.memory_space<vmem>>, %arg8: memref<16x128xf32, #tpu.memory_space<vmem>>) attributes {dimension_semantics = [#tpu.dimension_semantics<parallel>, #tpu.dimension_semantics<arbitrary>], iteration_bounds = array<i64: 1, 1>, scalar_prefetch = 0 : i64, scratch_operands = 1 : i64, tpu.core_type = #tpu.core_type<tc>, window_params = [{transform_indices = @transform_0, window_bounds = array<i64: 16, 128>}, {transform_indices = @transform_1, window_bounds = array<i64: 128, 128>}, {transform_indices = @transform_2, window_bounds = array<i64: 1, 128>}, {transform_indices = @transform_3, window_bounds = array<i64: 128, 128>}, {pipeline_mode = #tpu.pipeline_mode<synchronous>, transform_indices = @transform_4, window_bounds = array<i64: 1, 128>}, {transform_indices = @transform_5, window_bounds = array<i64: 16, 128>}]} {
    %c0_i32 = arith.constant 0 : i32
    %0 = arith.cmpi eq, %arg1, %c0_i32 : i32
    %1 = arith.extui %0 : i1 to i32
    %c0_i32_0 = arith.constant 0 : i32
    %2 = arith.cmpi ne, %1, %c0_i32_0 : i32
    scf.if %2 {
      %c0_19 = arith.constant 0 : index
      %c0_20 = arith.constant 0 : index
      %31 = vector.load %arg6[%c0_19, %c0_20] : memref<1x128xf32, #tpu.memory_space<vmem>>, vector<1x128xf32>
      %32 = vector.shape_cast %31 : vector<1x128xf32> to vector<1x128xf32>
      %33 = vector.broadcast %32 : vector<1x128xf32> to vector<16x128xf32>
      %c0_21 = arith.constant 0 : index
      %c0_22 = arith.constant 0 : index
      %34 = vector.load %arg8[%c0_21, %c0_22] : memref<16x128xf32, #tpu.memory_space<vmem>>, vector<16x128xf32>
      tpu.vector_store %arg8[%c0_21, %c0_22], %33 {strides = array<i32>} : memref<16x128xf32, #tpu.memory_space<vmem>>, vector<16x128xf32>,
    } else {
    }
    %c0 = arith.constant 0 : index
    %c0_1 = arith.constant 0 : index
    %3 = vector.load %arg2[%c0, %c0_1] : memref<16x128xbf16, #tpu.memory_space<vmem>>, vector<16x128xbf16>
    %c0_2 = arith.constant 0 : index
    %c0_3 = arith.constant 0 : index
    %4 = vector.load %arg3[%c0_2, %c0_3] : memref<128x128xbf16, #tpu.memory_space<vmem>>, vector<128x128xbf16>
    %cst = arith.constant dense<0.000000e+00> : vector<16x128xf32>
    %5 = tpu.matmul %3, %4, %cst {dimension_numbers = #tpu.dot_dimension_numbers<[1], [0], [0], [1], [0, 0, 1, 1], [], []>} : vector<16x128xbf16>, vector<128x128xbf16>, vector<16x128xf32> -> vector<16x128xf32>
    %c0_4 = arith.constant 0 : index
    %c0_5 = arith.constant 0 : index
    %6 = vector.load %arg4[%c0_4, %c0_5] : memref<1x128xf32, #tpu.memory_space<vmem>>, vector<1x128xf32>
    %7 = vector.broadcast %6 : vector<1x128xf32> to vector<16x128xf32>
    %8 = arith.addf %5, %7 : vector<16x128xf32>
    %9 = arith.mulf %8, %8 : vector<16x128xf32>
    %10 = arith.mulf %8, %9 : vector<16x128xf32>
    %cst_6 = arith.constant 4.471500e-02 : f32
    %11 = vector.broadcast %cst_6 : f32 to vector<16x128xf32>
    %12 = arith.mulf %11, %10 : vector<16x128xf32>
    %13 = arith.addf %8, %12 : vector<16x128xf32>
    %cst_7 = arith.constant 0.797884583 : f32
    %14 = vector.broadcast %cst_7 : f32 to vector<16x128xf32>
    %15 = arith.mulf %14, %13 : vector<16x128xf32>
    %16 = math.tanh %15 : vector<16x128xf32>
    %cst_8 = arith.constant 1.000000e+00 : f32
    %17 = vector.broadcast %cst_8 : f32 to vector<16x128xf32>
    %18 = arith.addf %17, %16 : vector<16x128xf32>
    %cst_9 = arith.constant 5.000000e-01 : f32
    %19 = vector.broadcast %cst_9 : f32 to vector<16x128xf32>
    %20 = arith.mulf %19, %18 : vector<16x128xf32>
    %21 = arith.mulf %8, %20 : vector<16x128xf32>
    %c0_10 = arith.constant 0 : index
    %c0_11 = arith.constant 0 : index
    %22 = vector.load %arg8[%c0_10, %c0_11] : memref<16x128xf32, #tpu.memory_space<vmem>>, vector<16x128xf32>
    %23 = arith.truncf %21 : vector<16x128xf32> to vector<16x128xbf16>
    %c0_12 = arith.constant 0 : index
    %c0_13 = arith.constant 0 : index
    %24 = vector.load %arg5[%c0_12, %c0_13] : memref<128x128xbf16, #tpu.memory_space<vmem>>, vector<128x128xbf16>
    %cst_14 = arith.constant dense<0.000000e+00> : vector<16x128xf32>
    %25 = tpu.matmul %23, %24, %cst_14 {dimension_numbers = #tpu.dot_dimension_numbers<[1], [0], [0], [1], [0, 0, 1, 1], [], []>} : vector<16x128xbf16>, vector<128x128xbf16>, vector<16x128xf32> -> vector<16x128xf32>
    %26 = arith.addf %22, %25 : vector<16x128xf32>
    %c0_15 = arith.constant 0 : index
    %c0_16 = arith.constant 0 : index
    %27 = vector.load %arg8[%c0_15, %c0_16] : memref<16x128xf32, #tpu.memory_space<vmem>>, vector<16x128xf32>
    tpu.vector_store %arg8[%c0_15, %c0_16], %26 {strides = array<i32>} : memref<16x128xf32, #tpu.memory_space<vmem>>, vector<16x128xf32>,
    %c0_i32_17 = arith.constant 0 : i32
    %28 = arith.cmpi eq, %arg1, %c0_i32_17 : i32
    %29 = arith.extui %28 : i1 to i32
    %c0_i32_18 = arith.constant 0 : i32
    %30 = arith.cmpi ne, %29, %c0_i32_18 : i32
    scf.if %30 {
      %c0_19 = arith.constant 0 : index
      %c0_20 = arith.constant 0 : index
      %31 = vector.load %arg8[%c0_19, %c0_20] : memref<16x128xf32, #tpu.memory_space<vmem>>, vector<16x128xf32>
      %c0_21 = arith.constant 0 : index
      %c0_22 = arith.constant 0 : index
      %32 = vector.load %arg7[%c0_21, %c0_22] : memref<16x128xf32, #tpu.memory_space<vmem>>, vector<16x128xf32>
      tpu.vector_store %arg7[%c0_21, %c0_22], %31 {strides = array<i32>} : memref<16x128xf32, #tpu.memory_space<vmem>>, vector<16x128xf32>,
    } else {
    }
    return
  }
  func.func @transform_0(%arg0: i32, %arg1: i32) -> (i32, i32) {
    %c0_i32 = arith.constant 0 : i32
    %c0_i32_0 = arith.constant 0 : i32
    return %arg0, %c0_i32 : i32, i32
  }
  func.func @transform_1(%arg0: i32, %arg1: i32) -> (i32, i32) {
    %c0_i32 = arith.constant 0 : i32
    %c0_i32_0 = arith.constant 0 : i32
    return %c0_i32, %arg1 : i32, i32
  }
  func.func @transform_2(%arg0: i32, %arg1: i32) -> (i32, i32) {
    %c0_i32 = arith.constant 0 : i32
    %c0_i32_0 = arith.constant 0 : i32
    return %c0_i32, %arg1 : i32, i32
  }
  func.func @transform_3(%arg0: i32, %arg1: i32) -> (i32, i32) {
    %c0_i32 = arith.constant 0 : i32
    %c0_i32_0 = arith.constant 0 : i32
    return %arg1, %c0_i32 : i32, i32
  }
  func.func @transform_4(%arg0: i32, %arg1: i32) -> (i32, i32) {
    %c0_i32 = arith.constant 0 : i32
    %c0_i32_0 = arith.constant 0 : i32
    %c0_i32_1 = arith.constant 0 : i32
    return %c0_i32, %c0_i32_0 : i32, i32
  }
  func.func @transform_5(%arg0: i32, %arg1: i32) -> (i32, i32) {
    %c0_i32 = arith.constant 0 : i32
    %c0_i32_0 = arith.constant 0 : i32
    return %arg0, %c0_i32 : i32, i32
  }
}

</mosaic_0001>

<bundles_post_ra>
// kernel: tpu_custom_call.1
= control target key start
LH: loop header
LB: loop body
LE: loop exit
PB: predicated region body
PF: predicated region fallthrough
CT: control target
= control target key end

     0   :  { %10 = vsyncpa [#allocation4], 0  ;;  %s555_s0 = inlined_call_operand.hbm [shape: bf16[16,128], index: 0, kind: input, shape index: {}]   ;;  %s556_s1 = inlined_call_operand.hbm [shape: bf16[128,128], index: 1, kind: input, shape index: {}]   ;;  %s557_s2 = inlined_call_operand.vmem [shape: f32[1,128], index: 2, kind: input, shape index: {}]   ;;  %s558_s3 = inlined_call_operand.hbm [shape: bf16[128,128], index: 3, kind: input, shape index: {}]   ;;  %s559_s4 = inlined_call_operand.vmem [shape: f32[1,128], index: 4, kind: input, shape index: {}]   ;;  %s560_s5 = inlined_call_operand.hbm [shape: f32[16,128], index: 5, kind: output, shape index: {}]  }
   0x1   :  { %11 = vsyncpa [#allocation7], 0 }
   0x2   :  { %12 = vsyncpa [#allocation5], 0  ;;  %s30_s20 = sshll.u32 %s556_s1, 4  ;;  %s499_s21 = smov [#allocation6]   ;;  %s31_s20 = int_to_ptr.hbm [resolvable:$true] %s30_s20 }
   0x3   :  { %s32_s22 = sshll.u32 %s499_s21, 4  ;;  %s17_s25 = sshll.u32 %s555_s0, 4  ;;  %s33_s22 = int_to_ptr.vmem [resolvable:$true] %s32_s22  ;;  %s18_s25 = int_to_ptr.hbm [resolvable:$true] %s17_s25 }
   0x4   :  { %s500_s26 = smov 64   ;;  %s501_s27 = smov 4  }
   0x5   :  { %38 = dma.hbm_to_vmem [thread:$0]  %s31_s20, 1024, %s33_s22, [#allocation7], %s500_s26, %s500_s26, %s501_s27  }
   0x6   :  { %s502_s28 = smov [#allocation3]   ;;  %s45_s7 = sshll.u32 %s558_s3, 4  ;;  %s46_s7 = int_to_ptr.hbm [resolvable:$true] %s45_s7 }
   0x7   :  { %s19_s29 = sshll.u32 %s502_s28, 4  ;;  %s503_s1 = smov [#allocation8]   ;;  %s20_s29 = int_to_ptr.vmem [resolvable:$true] %s19_s29 }
   0x8   :  { %25 = dma.hbm_to_vmem [thread:$0]  %s18_s25, 128, %s20_s29, [#allocation4], %s500_s26, %s500_s26, %s501_s27  }
   0x9   :  { %s47_s8 = sshll.u32 %s503_s1, 4  ;;  %s48_s8 = int_to_ptr.vmem [resolvable:$true] %s47_s8 }
   0xa   :  { %53 = dma.hbm_to_vmem [thread:$0]  %s46_s7, 1024, %s48_s8, [#allocation7], %s500_s26, %s500_s26, %s501_s27  }
   0xb   :  { %493 = dma.done.wait [#allocation4], 128  }
   0xc   :  { %494 = vsyncadd [#allocation4], 4294967168 }
   0xd   :  { %495 = dma.done.wait [#allocation7], 2048  }
   0xe   :  { %496 = vsyncadd [#allocation7], 4294965248  ;;  %v374_v0 = vld [vmem:[#allocation6 + $0x38] sm:$0xff]  ;;  %v373_v1 = vld [vmem:[#allocation6 + $0x30] sm:$0xff]  ;;  %s504_s10 = smov [#allocation9]   ;;  %s284_s14 = sshll.u32 %s560_s5, 4  ;;  %s285_s14 = int_to_ptr.hbm [resolvable:$true] %s284_s14 }
   0xf   :  { %154 = vmatpush.bf16.msra.mxu0 %v374_v0  ;;  %v372_v2 = vld [vmem:[#allocation6 + $0x28] sm:$0xff]  ;;  %v371_v3 = vld [vmem:[#allocation6 + $0x20] sm:$0xff]  ;;  %v370_v4 = vld [vmem:[#allocation6 + $0x18] sm:$0xff]  ;;  %s282_s11 = sshll.u32 %s504_s10, 4  ;;  %s505_s15 = smov 128   ;;  %s283_s11 = int_to_ptr.vmem [resolvable:$true] %s282_s11 }
  0x10   :  { %v369_v5 = vld [vmem:[#allocation6 + $0x10] sm:$0xff]  ;;  %v368_v6 = vld [vmem:[#allocation6 + $0x8] sm:$0xff]  ;;  %v367_v7 = vld [vmem:[#allocation6] sm:$0xff]  ;;  %s506_s16 = smov 8  }
  0x11   :  { %v366_v8 = vld [vmem:[#allocation3] sm:$0xff]  ;;  %v381_v10 = vld [vmem:[#allocation8 + $0x30] sm:$0xff]  ;;  %v380_v11 = vld [vmem:[#allocation8 + $0x28] sm:$0xff] }
  0x12   :  { %v382_v9 = vld [vmem:[#allocation8 + $0x38] sm:$0xff]  ;;  %v379_v12 = vld [vmem:[#allocation8 + $0x20] sm:$0xff]  ;;  %v377_v14 = vld [vmem:[#allocation8 + $0x10] sm:$0xff] }
  0x13   :  { %155 = vmatpush.bf16.msra.mxu0 %v373_v1  ;;  %253 = vmatpush.bf16.msra.mxu1 %v382_v9  ;;  %v378_v13 = vld [vmem:[#allocation8 + $0x18] sm:$0xff]  ;;  %v376_v15 = vld [vmem:[#allocation8 + $0x8] sm:$0xff]  ;;  %v375_v17 = vld [vmem:[#allocation8] sm:$0xff] }
  0x14   :  { %v391_v16 = vld [vmem:[%s557_s2] ss:$0 sm:$0xff] }
  0x15   :  { %v392_v41 = vld [vmem:[%s559_s4] ss:$0 sm:$0xff] }
  0x17   :  { %156 = vmatpush.bf16.msra.mxu0 %v372_v2  ;;  %254 = vmatpush.bf16.msra.mxu1 %v381_v10 }
  0x1b   :  { %157 = vmatpush.bf16.msra.mxu0 %v371_v3  ;;  %255 = vmatpush.bf16.msra.mxu1 %v380_v11 }
  0x1f   :  { %158 = vmatpush.bf16.msra.mxu0 %v370_v4  ;;  %256 = vmatpush.bf16.msra.mxu1 %v379_v12 }
  0x23   :  { %159 = vmatpush.bf16.msra.mxu0 %v369_v5  ;;  %257 = vmatpush.bf16.msra.mxu1 %v378_v13 }
  0x27   :  { %160 = vmatpush.bf16.msra.mxu0 %v368_v6  ;;  %258 = vmatpush.bf16.msra.mxu1 %v377_v14 }
  0x2b   :  { %161 = vmatpush.bf16.msra.mxu0 %v367_v7  ;;  %259 = vmatpush.bf16.msra.mxu1 %v376_v15 }
  0x2e   :  { %162 = vmatmul.bf16.vlgmr.msra.gmra.mxu0 %v366_v8 }
  0x2f   :  { %260 = vmatpush.bf16.msra.mxu1 %v375_v17 }
  0xab   :  { %v163_v18 = vpop.f32.mrf.mxu0 }
  0xac   :  { %v164_v19 = vadd.f32 %v391_v16, %v163_v18 }
  0xae   :  { %v168_v20 = vmul.f32 %v164_v19, %v164_v19 }
  0xb0   :  { %v170_v21 = vmul.f32 %v168_v20, %v164_v19 }
  0xb2   :  { %v172_v22 = vmul.f32 0.044715, %v170_v21 }
  0xb3   :  { %v165_v23 = vpop.f32.mrf.mxu0 }
  0xb4   :  { %v174_v24 = vadd.f32 %v172_v22, %v164_v19  ;;  %v166_v25 = vadd.f32 %v391_v16, %v165_v23 }
  0xb6   :  { %v169_v26 = vmul.f32 %v166_v25, %v166_v25  ;;  %v176_v27 = vmul.f32 0.7978846, %v174_v24 }
  0xb8   :  { %v171_v28 = vmul.f32 %v169_v26, %v166_v25  ;;  %393 = vtanh.f32 %v176_v27 }
  0xba   :  { %v173_v29 = vmul.f32 0.044715, %v171_v28 }
  0xbc   :  { %v175_v30 = vadd.f32 %v173_v29, %v166_v25 }
  0xbe   :  { %v177_v31 = vmul.f32 0.7978846, %v175_v30  ;;  %v394_v32 = vpop.eup %393 }
  0xbf   :  { %v180_v33 = vadd.f32 1.0, %v394_v32 }
  0xc0   :  { %395 = vtanh.f32 %v177_v31 }
  0xc1   :  { %v182_v36 = vmul.f32 0.5, %v180_v33 }
  0xc3   :  { %v184_v38 = vmul.f32 %v182_v36, %v164_v19 }
  0xc6   :  { %v396_v34 = vpop.eup %395 }
  0xc7   :  { %v181_v35 = vadd.f32 1.0, %v396_v34 }
  0xc9   :  { %v183_v37 = vmul.f32 0.5, %v181_v35 }
  0xcb   :  { %v185_v39 = vmul.f32 %v183_v37, %v166_v25 }
  0xcd   :  { %v188_v40 = vpack.c.bf16 %v185_v39, %v184_v38 }
  0xcf   :  { %261 = vmatmul.bf16.vlgmr.msra.gmra.mxu1 %v188_v40 }
 0x14c   :  { %v262_v42 = vpop.f32.mrf.mxu1 }
 0x14d   :  { %v267_v43 = vadd.f32 %v392_v41, %v262_v42 }
 0x14f   :  { %276 = vst [vmem:[#allocation9] sm:$0xff] %v267_v43 }
 0x154   :  { %v264_v44 = vpop.f32.mrf.mxu1 }
 0x155   :  { %v268_v45 = vadd.f32 %v392_v41, %v264_v44 }
 0x157   :  { %277 = vst [vmem:[#allocation9 + $0x8] sm:$0xff] %v268_v45 }
 0x158   :  { %290 = dma.vmem_to_hbm [thread:$0]  %s283_s11, 256, %s285_s14, [#allocation5], %s505_s15, %s505_s15, %s506_s16  }
 0x159   :  { %497 = dma.done.wait [#allocation5], 256  }
 0x15a   :  { %498 = vsyncadd [#allocation5], 4294967040 }
 0x15b   :  { %295 = vsyncpa [#allocation4], 1 }
 0x15c   :  { %296 = vsyncpa [#allocation7], 1 }
 0x15d   :  { %297 = vsyncpa [#allocation5], 1 }

// kernel: tpu_custom_call.1
= control target key start
LH: loop header
LB: loop body
LE: loop exit
PB: predicated region body
PF: predicated region fallthrough
CT: control target
= control target key end

     0   :  { %10 = vsyncpa [#allocation4], 0  ;;  %s555_s0 = inlined_call_operand.hbm [shape: bf16[16,128], index: 0, kind: input, shape index: {}]   ;;  %s556_s1 = inlined_call_operand.hbm [shape: bf16[128,128], index: 1, kind: input, shape index: {}]   ;;  %s557_s2 = inlined_call_operand.vmem [shape: f32[1,128], index: 2, kind: input, shape index: {}]   ;;  %s558_s3 = inlined_call_operand.hbm [shape: bf16[128,128], index: 3, kind: input, shape index: {}]   ;;  %s559_s4 = inlined_call_operand.vmem [shape: f32[1,128], index: 4, kind: input, shape index: {}]   ;;  %s560_s5 = inlined_call_operand.hbm [shape: f32[16,128], index: 5, kind: output, shape index: {}]  }
   0x1   :  { %11 = vsyncpa [#allocation7], 0 }
   0x2   :  { %12 = vsyncpa [#allocation5], 0  ;;  %s30_s20 = sshll.u32 %s556_s1, 4  ;;  %s499_s21 = smov [#allocation6]   ;;  %s31_s20 = int_to_ptr.hbm [resolvable:$true] %s30_s20 }
   0x3   :  { %s32_s22 = sshll.u32 %s499_s21, 4  ;;  %s17_s25 = sshll.u32 %s555_s0, 4  ;;  %s33_s22 = int_to_ptr.vmem [resolvable:$true] %s32_s22  ;;  %s18_s25 = int_to_ptr.hbm [resolvable:$true] %s17_s25 }
   0x4   :  { %s500_s26 = smov 64   ;;  %s501_s27 = smov 4  }
   0x5   :  { %38 = dma.hbm_to_vmem [thread:$0]  %s31_s20, 1024, %s33_s22, [#allocation7], %s500_s26, %s500_s26, %s501_s27  }
   0x6   :  { %s502_s28 = smov [#allocation3]   ;;  %s45_s7 = sshll.u32 %s558_s3, 4  ;;  %s46_s7 = int_to_ptr.hbm [resolvable:$true] %s45_s7 }
   0x7   :  { %s19_s29 = sshll.u32 %s502_s28, 4  ;;  %s503_s1 = smov [#allocation8]   ;;  %s20_s29 = int_to_ptr.vmem [resolvable:$true] %s19_s29 }
   0x8   :  { %25 = dma.hbm_to_vmem [thread:$0]  %s18_s25, 128, %s20_s29, [#allocation4], %s500_s26, %s500_s26, %s501_s27  }
   0x9   :  { %s47_s8 = sshll.u32 %s503_s1, 4  ;;  %s48_s8 = int_to_ptr.vmem [resolvable:$true] %s47_s8 }
   0xa   :  { %53 = dma.hbm_to_vmem [thread:$0]  %s46_s7, 1024, %s48_s8, [#allocation7], %s500_s26, %s500_s26, %s501_s27  }
   0xb   :  { %493 = dma.done.wait [#allocation4], 128  }
   0xc   :  { %494 = vsyncadd [#allocation4], 4294967168 }
   0xd   :  { %495 = dma.done.wait [#allocation7], 2048  }
   0xe   :  { %496 = vsyncadd [#allocation7], 4294965248  ;;  %v374_v0 = vld [vmem:[#allocation6 + $0x38] sm:$0xff]  ;;  %v373_v1 = vld [vmem:[#allocation6 + $0x30] sm:$0xff]  ;;  %s504_s10 = smov [#allocation9]   ;;  %s284_s14 = sshll.u32 %s560_s5, 4  ;;  %s285_s14 = int_to_ptr.hbm [resolvable:$true] %s284_s14 }
   0xf   :  { %154 = vmatpush.bf16.msra.mxu0 %v374_v0  ;;  %v372_v2 = vld [vmem:[#allocation6 + $0x28] sm:$0xff]  ;;  %v371_v3 = vld [vmem:[#allocation6 + $0x20] sm:$0xff]  ;;  %v370_v4 = vld [vmem:[#allocation6 + $0x18] sm:$0xff]  ;;  %s282_s11 = sshll.u32 %s504_s10, 4  ;;  %s505_s15 = smov 128   ;;  %s283_s11 = int_to_ptr.vmem [resolvable:$true] %s282_s11 }
  0x10   :  { %v369_v5 = vld [vmem:[#allocation6 + $0x10] sm:$0xff]  ;;  %v368_v6 = vld [vmem:[#allocation6 + $0x8] sm:$0xff]  ;;  %v367_v7 = vld [vmem:[#allocation6] sm:$0xff]  ;;  %s506_s16 = smov 8  }
  0x11   :  { %v366_v8 = vld [vmem:[#allocation3] sm:$0xff]  ;;  %v381_v10 = vld [vmem:[#allocation8 + $0x30] sm:$0xff]  ;;  %v380_v11 = vld [vmem:[#allocation8 + $0x28] sm:$0xff] }
  0x12   :  { %v382_v9 = vld [vmem:[#allocation8 + $0x38] sm:$0xff]  ;;  %v379_v12 = vld [vmem:[#allocation8 + $0x20] sm:$0xff]  ;;  %v377_v14 = vld [vmem:[#allocation8 + $0x10] sm:$0xff] }
  0x13   :  { %155 = vmatpush.bf16.msra.mxu0 %v373_v1  ;;  %253 = vmatpush.bf16.msra.mxu1 %v382_v9  ;;  %v378_v13 = vld [vmem:[#allocation8 + $0x18] sm:$0xff]  ;;  %v376_v15 = vld [vmem:[#allocation8 + $0x8] sm:$0xff]  ;;  %v375_v17 = vld [vmem:[#allocation8] sm:$0xff] }
  0x14   :  { %v391_v16 = vld [vmem:[%s557_s2] ss:$0 sm:$0xff] }
  0x15   :  { %v392_v41 = vld [vmem:[%s559_s4] ss:$0 sm:$0xff] }
  0x17   :  { %156 = vmatpush.bf16.msra.mxu0 %v372_v2  ;;  %254 = vmatpush.bf16.msra.mxu1 %v381_v10 }
  0x1b   :  { %157 = vmatpush.bf16.msra.mxu0 %v371_v3  ;;  %255 = vmatpush.bf16.msra.mxu1 %v380_v11 }
  0x1f   :  { %158 = vmatpush.bf16.msra.mxu0 %v370_v4  ;;  %256 = vmatpush.bf16.msra.mxu1 %v379_v12 }
  0x23   :  { %159 = vmatpush.bf16.msra.mxu0 %v369_v5  ;;  %257 = vmatpush.bf16.msra.mxu1 %v378_v13 }
  0x27   :  { %160 = vmatpush.bf16.msra.mxu0 %v368_v6  ;;  %258 = vmatpush.bf16.msra.mxu1 %v377_v14 }
  0x2b   :  { %161 = vmatpush.bf16.msra.mxu0 %v367_v7  ;;  %259 = vmatpush.bf16.msra.mxu1 %v376_v15 }
  0x2e   :  { %162 = vmatmul.bf16.vlgmr.msra.gmra.mxu0 %v366_v8 }
  0x2f   :  { %260 = vmatpush.bf16.msra.mxu1 %v375_v17 }
  0xab   :  { %v163_v18 = vpop.f32.mrf.mxu0 }
  0xac   :  { %v164_v19 = vadd.f32 %v391_v16, %v163_v18 }
  0xae   :  { %v168_v20 = vmul.f32 %v164_v19, %v164_v19 }
  0xb0   :  { %v170_v21 = vmul.f32 %v168_v20, %v164_v19 }
  0xb2   :  { %v172_v22 = vmul.f32 0.044715, %v170_v21 }
  0xb3   :  { %v165_v23 = vpop.f32.mrf.mxu0 }
  0xb4   :  { %v174_v24 = vadd.f32 %v172_v22, %v164_v19  ;;  %v166_v25 = vadd.f32 %v391_v16, %v165_v23 }
  0xb6   :  { %v169_v26 = vmul.f32 %v166_v25, %v166_v25  ;;  %v176_v27 = vmul.f32 0.7978846, %v174_v24 }
  0xb8   :  { %v171_v28 = vmul.f32 %v169_v26, %v166_v25  ;;  %393 = vtanh.f32 %v176_v27 }
  0xba   :  { %v173_v29 = vmul.f32 0.044715, %v171_v28 }
  0xbc   :  { %v175_v30 = vadd.f32 %v173_v29, %v166_v25 }
  0xbe   :  { %v177_v31 = vmul.f32 0.7978846, %v175_v30  ;;  %v394_v32 = vpop.eup %393 }
  0xbf   :  { %v180_v33 = vadd.f32 1.0, %v394_v32 }
  0xc0   :  { %395 = vtanh.f32 %v177_v31 }
  0xc1   :  { %v182_v36 = vmul.f32 0.5, %v180_v33 }
  0xc3   :  { %v184_v38 = vmul.f32 %v182_v36, %v164_v19 }
  0xc6   :  { %v396_v34 = vpop.eup %395 }
  0xc7   :  { %v181_v35 = vadd.f32 1.0, %v396_v34 }
  0xc9   :  { %v183_v37 = vmul.f32 0.5, %v181_v35 }
  0xcb   :  { %v185_v39 = vmul.f32 %v183_v37, %v166_v25 }
  0xcd   :  { %v188_v40 = vpack.c.bf16 %v185_v39, %v184_v38 }
  0xcf   :  { %261 = vmatmul.bf16.vlgmr.msra.gmra.mxu1 %v188_v40 }
 0x14c   :  { %v262_v42 = vpop.f32.mrf.mxu1 }
 0x14d   :  { %v267_v43 = vadd.f32 %v392_v41, %v262_v42 }
 0x14f   :  { %276 = vst [vmem:[#allocation9] sm:$0xff] %v267_v43 }
 0x154   :  { %v264_v44 = vpop.f32.mrf.mxu1 }
 0x155   :  { %v268_v45 = vadd.f32 %v392_v41, %v264_v44 }
 0x157   :  { %277 = vst [vmem:[#allocation9 + $0x8] sm:$0xff] %v268_v45 }
 0x158   :  { %290 = dma.vmem_to_hbm [thread:$0]  %s283_s11, 256, %s285_s14, [#allocation5], %s505_s15, %s505_s15, %s506_s16  }
 0x159   :  { %497 = dma.done.wait [#allocation5], 256  }
 0x15a   :  { %498 = vsyncadd [#allocation5], 4294967040 }
 0x15b   :  { %295 = vsyncpa [#allocation4], 1 }
 0x15c   :  { %296 = vsyncpa [#allocation7], 1 }
 0x15d   :  { %297 = vsyncpa [#allocation5], 1 }

</bundles_post_ra>
